<compile_context>
chip_gen: v7x
topology: tpu7x:2x2x1
jax: 0.10.0
libtpu: 0.0.40
codegen_flags: <defaults>
</compile_context>

<pallas_src>
import functools

import jax
import jax.numpy as jnp
from jax.experimental import pallas as pl
from jax.experimental.pallas import tpu as pltpu

_LANES = 128
_SUBLANES = 8
_DEFAULT_BLOCK_BYTES = 4 << 20   # ~4 MiB per pipelined buffer (per review)
_VMEM_LIMIT_BYTES = 40 << 20     # 2 in-bufs + 2 out-bufs at 4 MiB = 16 MiB << 40 MiB


def _make_snake_kernel(beta: float):
    # beta is a compile-time Python float (non-trainable parameter in the module).
    # NOTE: beta == 0 is undefined and raises at trace time (matches PyTorch's
    # division-by-zero semantics being an error condition).
    beta = float(beta)
    two_beta = 2.0 * beta
    c = 1.0 / (2.0 * beta)   # x + (1/b) sin^2(bx) == x + c*(1 - cos(2bx))

    def _snake_kernel(x_ref, o_ref):
        x = x_ref[...].astype(jnp.float32)
        y = x + c * (1.0 - jnp.cos(two_beta * x))
        o_ref[...] = y.astype(o_ref.dtype)

    return _snake_kernel


def _choose_block_rows(rows: int, itemsize: int, block_bytes: int) -> int:
    """Byte-sized, (8,128)-legal block rows; >=2 grid steps when array is large."""
    # Sublane-pack multiple per dtype: 8 (f32), 16 (bf16), 32 (int8/fp8).
    sub = max(_SUBLANES, 32 // max(1, itemsize))
    tile_rows = max(sub, block_bytes // (_LANES * itemsize))
    block_rows = min(tile_rows, rows)
    # Megacore: guarantee >=2 grid steps for large-enough arrays so the
    # "parallel" axis can be sharded across both v7x TensorCores.
    if rows >= 2 * sub:
        half = -(-rows // 2)               # cdiv(rows, 2)
        half = -(-half // sub) * sub       # round up to sublane multiple
        block_rows = min(block_rows, half)
    if rows >= sub:
        block_rows = max(sub, (block_rows // sub) * sub)   # multiple of sub
    else:
        block_rows = rows                  # full extent is always legal
    return block_rows


def _snake_2d(x2d: jax.Array, beta: float, block_bytes: int) -> jax.Array:
    """Run the streaming kernel on a lane-dense (rows, 128) slab."""
    rows = x2d.shape[0]
    dtype = x2d.dtype
    itemsize = jnp.dtype(dtype).itemsize
    block_rows = _choose_block_rows(rows, itemsize, block_bytes)
    grid = (pl.cdiv(rows, block_rows),)          # ragged last block handled by Pallas
    n_elems = rows * _LANES

    return pl.pallas_call(
        _make_snake_kernel(beta),
        out_shape=jax.ShapeDtypeStruct((rows, _LANES), dtype),
        grid=grid,
        in_specs=[pl.BlockSpec((block_rows, _LANES), lambda i: (i, 0))],
        out_specs=pl.BlockSpec((block_rows, _LANES), lambda i: (i, 0)),
        compiler_params=pltpu.CompilerParams(
            dimension_semantics=("parallel",),
            vmem_limit_bytes=_VMEM_LIMIT_BYTES,
        ),
        cost_estimate=pl.CostEstimate(
            flops=4 * n_elems,
            transcendentals=n_elems,
            bytes_accessed=2 * n_elems * itemsize,
        ),
    )(x2d)


@functools.partial(jax.jit, static_argnames=("beta", "block_bytes"))
def snake(x: jax.Array, beta: float = 0.5, *,
          block_bytes: int = _DEFAULT_BLOCK_BYTES) -> jax.Array:
    """Snake activation as a Pallas TPU kernel (forward pass of the module)."""
    orig_shape = x.shape
    dtype = x.dtype
    n = x.size
    if n == 0:
        return x

    x_flat = jnp.ravel(x)                       # contiguous reshape: no copy
    n_aligned = (n // _LANES) * _LANES

    if n_aligned == n:
        # Fast path (typical conv feature maps): zero extra HBM passes.
        x2d = x_flat.reshape(n // _LANES, _LANES)
        return _snake_2d(x2d, beta, block_bytes).reshape(orig_shape)

    beta_f = float(beta)

    def _tail_ref(t):
        t32 = t.astype(jnp.float32)
        return (t32 + (1.0 / beta_f) * jnp.square(jnp.sin(beta_f * t32))).astype(dtype)

    if n_aligned == 0:
        # Tiny array (< 128 elements): not worth a kernel launch.
        return _tail_ref(x_flat).reshape(orig_shape)

    # Unaligned size: kernel on the 128-aligned prefix, reference formula on the
    # <=127-element tail.  (No full-array pad; the prefix slice + final concat
    # are the only extra XLA passes on this rare path.)
    head2d = x_flat[:n_aligned].reshape(n_aligned // _LANES, _LANES)
    head_out = _snake_2d(head2d, beta, block_bytes).reshape(-1)
    tail_out = _tail_ref(x_flat[n_aligned:])
    return jnp.concatenate([head_out, tail_out]).reshape(orig_shape)


def snake_ref(x: jax.Array, beta: float = 0.5) -> jax.Array:
    """Pure-JAX reference matching the PyTorch forward exactly."""
    return x + (1.0 / beta) * jnp.square(jnp.sin(beta * x))


if __name__ == "__main__":
    key = jax.random.PRNGKey(0)
    beta = 0.5  # Snake(beta=0.5), non-trainable (as in the module init)

    # NCHW feature map, aligned size (2*4*16*16 = 2048 = 16 lane-rows).
    x = jax.random.normal(key, (2, 4, 16, 16), dtype=jnp.float32)
    y = jax.block_until_ready(snake(x, beta=beta))
    assert y.shape == x.shape and y.dtype == x.dtype
    assert jnp.allclose(y, snake_ref(x, beta=beta), atol=1e-5, rtol=1e-5)

    # Force a multi-block grid with a tiny block override (8 rows per block).
    y2 = jax.block_until_ready(snake(x, beta=beta, block_bytes=8 * _LANES * 4))
    assert jnp.allclose(y2, snake_ref(x, beta=beta), atol=1e-5, rtol=1e-5)

    # Unaligned size (3*5*7*13 = 1365): aligned-prefix kernel + reference tail.
    x_odd = jax.random.normal(jax.random.PRNGKey(1), (3, 5, 7, 13), dtype=jnp.float32)
    y_odd = jax.block_until_ready(snake(x_odd, beta=beta))
    assert y_odd.shape == x_odd.shape and y_odd.dtype == x_odd.dtype
    assert jnp.allclose(y_odd, snake_ref(x_odd, beta=beta), atol=1e-5, rtol=1e-5)

    # bf16 I/O: block rows scale with itemsize, compute stays f32.
    x_bf16 = jax.random.normal(jax.random.PRNGKey(2), (2, 4, 16, 16), dtype=jnp.bfloat16)
    y_bf16 = jax.block_until_ready(snake(x_bf16, beta=beta))
    assert y_bf16.shape == x_bf16.shape and y_bf16.dtype == jnp.bfloat16
    assert jnp.allclose(y_bf16.astype(jnp.float32),
                        snake_ref(x_bf16.astype(jnp.float32), beta=beta),
                        atol=5e-2, rtol=2e-2)

    print("KERNEL_OK")
</pallas_src>

<mosaic_0001>
module attributes {stable_mosaic.version = 11 : i64} {
  func.func @_snake_kernel(%arg0: i32, %arg1: memref<8x128xf32, #tpu.memory_space<vmem>>, %arg2: memref<8x128xf32, #tpu.memory_space<vmem>>) attributes {dimension_semantics = [#tpu.dimension_semantics<parallel>], iteration_bounds = array<i64: 2>, scalar_prefetch = 0 : i64, scratch_operands = 0 : i64, tpu.core_type = #tpu.core_type<tc>, window_params = [{transform_indices = @transform_0, window_bounds = array<i64: 8, 128>}, {transform_indices = @transform_1, window_bounds = array<i64: 8, 128>}]} {
    %c0 = arith.constant 0 : index
    %c0_0 = arith.constant 0 : index
    %0 = vector.load %arg1[%c0, %c0_0] : memref<8x128xf32, #tpu.memory_space<vmem>>, vector<8x128xf32>
    %cst = arith.constant 1.000000e+00 : f32
    %1 = vector.broadcast %cst : f32 to vector<8x128xf32>
    %2 = arith.mulf %1, %0 : vector<8x128xf32>
    %3 = math.cos %2 : vector<8x128xf32>
    %cst_1 = arith.constant 1.000000e+00 : f32
    %4 = vector.broadcast %cst_1 : f32 to vector<8x128xf32>
    %5 = arith.subf %4, %3 : vector<8x128xf32>
    %cst_2 = arith.constant 1.000000e+00 : f32
    %6 = vector.broadcast %cst_2 : f32 to vector<8x128xf32>
    %7 = arith.mulf %6, %5 : vector<8x128xf32>
    %8 = arith.addf %0, %7 : vector<8x128xf32>
    %c0_3 = arith.constant 0 : index
    %c0_4 = arith.constant 0 : index
    %9 = vector.load %arg2[%c0_3, %c0_4] : memref<8x128xf32, #tpu.memory_space<vmem>>, vector<8x128xf32>
    tpu.vector_store %arg2[%c0_3, %c0_4], %8 {strides = array<i32>} : memref<8x128xf32, #tpu.memory_space<vmem>>, vector<8x128xf32>,
    return
  }
  func.func @transform_0(%arg0: i32) -> (i32, i32) {
    %c0_i32 = arith.constant 0 : i32
    %c0_i32_0 = arith.constant 0 : i32
    return %arg0, %c0_i32 : i32, i32
  }
  func.func @transform_1(%arg0: i32) -> (i32, i32) {
    %c0_i32 = arith.constant 0 : i32
    %c0_i32_0 = arith.constant 0 : i32
    return %arg0, %c0_i32 : i32, i32
  }
}

</mosaic_0001>

<bundles_post_ra>
// kernel: snake.1
= control target key start
LH: loop header
LB: loop body
LE: loop exit
PB: predicated region body
PF: predicated region fallthrough
CT: control target
= control target key end

     0   :  { %s331_s6 = smov 0   ;;  %s377_s0 = inlined_call_operand.vmem [shape: f32[16,128], index: 0, kind: input, shape index: {}]   ;;  %s378_s1 = inlined_call_operand.vmem [shape: f32[16,128], index: 1, kind: output, shape index: {}]  }
   0x1 LB: > { %s272_s7 = sadd.s32 4294967295, %s313_s6   ;;  %p276_p0 = scmp.ge.s32.totalorder %s313_s6, 1  ;;  %s313_s6 = sphi %s331_s6, %s11_s6  }
   0x2   : > { %p86_p1 = scmp.lt.s32.totalorder %s313_s6, 3 }
   0x4   : > { %p87_p2 = pnand %p276_p0, %p86_p1 }
   0x5   : > { %p104_p3 = scmp.lt.s32.totalorder (!%p87_p2), %s272_s7, 1  ;;  %v315_v12 = vmov (!%p87_p2), 683565275   ;;  %v316_v14 = vmov (!%p87_p2), 2475754826  }
   0x6   : > { %90 = sbr.rel (%p87_p2) target bundleno = 102 (0x66), region = 24  ;;  %v317_v16 = vmov (!%p87_p2), 2131351028   ;;  %v318_v18 = vmov (!%p87_p2), 2102212464  }
   0x7   : > { %v319_v20 = vmov (!%p87_p2), 920167782   ;;  %v320_v27 = vmov (!%p87_p2), 1326507024  }
   0xd   : > { %s380_s7 = smov (!%p104_p3, %s272_s7), 1 }
   0xe   : > { %s277_s8 = sshll.u32 %s380_s7, 3 }
   0xf   : > { %s107_s11 = scalar_lea.vmem %s377_s0, %s277_s8  ;;  %s111_s14 = scalar_lea.vmem %s378_s1, %s277_s8 }
  0x10   : > { %v347_v0 = vld [vmem:[%s107_s11] sm:$0xff] }
  0x11   : > { %v116_v1 = vand.u32 2139095040, %v347_v0  ;;  %v113_v3 = vand.u32 2147483647, %v347_v0  ;;  %vm115_vm7 = vcmp.lt.s32.totalorder %v347_v0, 0  ;;  %vm205_vm12 = vweird.f32 %v347_v0 }
  0x13   : > { %v117_v2 = vshrl.u32 %v116_v1, 23  ;;  %v120_v6 = vand.u32 8388607, %v113_v3  ;;  %vm114_vm8 = vcmp.le.f32.partialorder %v113_v3, 0.7853982 }
  0x15   : > { %v279_v4 = vadd.s32 4294967169, %v117_v2  ;;  %v121_v9 = vor.u32 8388608, %v120_v6 }
  0x17   : > { %v123_v5 = vadd.s32 1, %v279_v4  ;;  %v161_v29 = vshll.u32 %v121_v9, 8 }
  0x19   : > { %vm124_vm0 = vcmp.gt.s32.totalorder %v123_v5, 0 }
  0x1a   : > { %v125_v7 = vsel %vm124_vm0, %v123_v5, 0 }
  0x1b   : > { %v127_v8 = vand.u32 31, %v125_v7  ;;  %v126_v10 = vshrl.u32 %v125_v7, 5 }
  0x1d   : > { %v128_v11 = vsub.s32 32, %v127_v8  ;;  %v130_v13 = vshll.u32 %v315_v12, %v127_v8  ;;  %v133_v15 = vshll.u32 %v316_v14, %v127_v8  ;;  %v136_v17 = vshll.u32 %v317_v16, %v127_v8 }
  0x1e   : > { %v139_v19 = vshll.u32 %v318_v18, %v127_v8  ;;  %v142_v21 = vshll.u32 %v319_v20, %v127_v8  ;;  %vm145_vm1 = vcmp.lt.s32.totalorder %v126_v10, 1  ;;  %vm148_vm2 = vcmp.lt.s32.totalorder %v126_v10, 4 }
  0x1f   : > { %v129_v22 = vshrl.u32 %v315_v12, %v128_v11  ;;  %v131_v23 = vshrl.u32 %v316_v14, %v128_v11  ;;  %v134_v24 = vshrl.u32 %v317_v16, %v128_v11  ;;  %v137_v25 = vshrl.u32 %v318_v18, %v128_v11 }
  0x20   : > { %v140_v26 = vshrl.u32 %v319_v20, %v128_v11  ;;  %v143_v28 = vshrl.u32 %v320_v27, %v128_v11  ;;  %vm146_vm3 = vcmp.lt.s32.totalorder %v126_v10, 2  ;;  %vm147_vm4 = vcmp.lt.s32.totalorder %v126_v10, 3 }
  0x21   : > { %v132_v30 = vor.u32 %v131_v23, %v130_v13  ;;  %v135_v31 = vor.u32 %v134_v24, %v133_v15  ;;  %v138_v32 = vor.u32 %v137_v25, %v136_v17 }
  0x22   : > { %v141_v33 = vor.u32 %v140_v26, %v139_v19  ;;  %v144_v34 = vor.u32 %v143_v28, %v142_v21 }
  0x23   : > { %v149_v35 = vsel %vm145_vm1, %v129_v22, %v132_v30  ;;  %v150_v36 = vsel %vm148_vm2, %v138_v32, 2102212464  ;;  %v153_v37 = vsel %vm145_vm1, %v132_v30, %v135_v31  ;;  %v157_v38 = vsel %vm145_vm1, %v135_v31, %v138_v32 }
  0x24   : > { %v151_v39 = vsel %vm147_vm4, %v135_v31, %v150_v36  ;;  %v154_v40 = vsel %vm148_vm2, %v141_v33, 920167782  ;;  %v158_v41 = vsel %vm148_vm2, %v144_v34, 1326507024 }
  0x25   : > { %v155_v42 = vsel %vm147_vm4, %v138_v32, %v154_v40  ;;  %v159_v43 = vsel %vm147_vm4, %v141_v33, %v158_v41  ;;  %v152_v44 = vsel %vm146_vm3, %v149_v35, %v151_v39 }
  0x26   : > { %v156_v45 = vsel %vm146_vm3, %v153_v37, %v155_v42  ;;  %v160_v46 = vsel %vm146_vm3, %v157_v38, %v159_v43  ;;  %v168_v51 = vmul.u32 %v161_v29, %v152_v44 }
  0x27   : > { %v353_v47 = vmul.u32.u64.low %v161_v29, %v160_v46  ;;  %v354_v48 = vmul.u32.u64.high %v161_v29, %v160_v46, %v353_v47  ;;  %v356_v49 = vmul.u32.u64.low %v161_v29, %v156_v45  ;;  %v357_v50 = vmul.u32.u64.high %v161_v29, %v156_v45, %v356_v49 }
  0x29   : > { %vm170_vm5 = vc.u32 %v354_v48, %v356_v49  ;;  %v171_v52 = vadd.s32 1, %v357_v50  ;;  %v169_v63 = vadd.s32 %v356_v49, %v354_v48 }
  0x2b   : > { %v172_v53 = vsel %vm170_vm5, %v171_v52, %v357_v50 }
  0x2c   : > { %v173_v54 = vadd.s32 %v172_v53, %v168_v51 }
  0x2e   : > { %v174_v55 = vadd.s32 536870912, %v173_v54 }
  0x30   : > { %v175_v56 = vshrl.u32 %v174_v55, 30 }
  0x32   : > { %v176_v57 = vshll.u32 %v175_v56, 30  ;;  %v199_v15 = vsub.s32 4, %v175_v56 }
  0x34   : > { %v177_v58 = vsub.s32 %v173_v54, %v176_v57  ;;  %v200_v18 = vsel %vm115_vm7, %v199_v15, %v175_v56 }
  0x35   : > { %v202_v19 = vsel %vm114_vm8, 0, %v200_v18 }
  0x36   : > { %v179_v59 = vsub.s32 0, %v177_v58  ;;  %v206_v20 = vand.u32 3, %v202_v19 }
  0x38   : > { %v280_v60 = vmin.u32 %v179_v59, %v177_v58  ;;  %vm211_vm9 = vcmp.eq.s32.totalorder %v206_v20, 2  ;;  %vm208_vm10 = vcmp.eq.s32.totalorder %v206_v20, 0  ;;  %vm207_vm11 = vcmp.lt.s32.totalorder %v206_v20, 2 }
  0x3a   : > { %v181_v61 = vclz %v280_v60 }
  0x3c   : > { %v281_v62 = vadd.s32 4294967294, %v181_v61 }
  0x3e   : > { %vm282_vm6 = vcmp.lt.s32.totalorder %v281_v62, 0 }
  0x3f   : > { %v184_v1 = vsel %vm282_vm6, 0, %v281_v62 }
  0x40   : > { %v185_v2 = vsub.s32 32, %v184_v1  ;;  %v186_v4 = vshll.u32 %v177_v58, %v184_v1  ;;  %v189_v5 = vsub.s32 4294967266, %v184_v1 }
  0x42   : > { %v187_v6 = vshrl.u32 %v169_v63, %v185_v2  ;;  %v190_v7 = vadd.s32 127, %v189_v5 }
  0x44   : > { %v188_v8 = vor.u32 %v187_v6, %v186_v4  ;;  %v191_v9 = vshll.u32 %v190_v7, 23 }
  0x46   : > { %v192_v10 = vor.u32 4788187, %v191_v9  ;;  %v195_v11 = vcvt.s32.f32 %v188_v8 }
  0x48   : > { %v193_v12 = vand.u32 2147483647, %v192_v10 }
  0x4a   : > { %v196_v13 = vmul.f32 %v195_v11, %v193_v12 }
  0x4c   : > { %v197_v14 = vxor.u32 2147483648, %v196_v13 }
  0x4e   : > { %v198_v16 = vsel %vm115_vm7, %v197_v14, %v196_v13 }
  0x4f   : > { %v201_v17 = vsel %vm114_vm8, %v347_v0, %v198_v16 }
  0x50   : > { %303 = vcosq.f32 %v201_v17 }
  0x51   : > { %305 = vsinq.f32 %v201_v17 }
  0x5a   : > { %v304_v21 = vpop.eup %303 }
  0x5b   : > { %v306_v22 = vpop.eup %305  ;;  %v212_v23 = vxor.u32 2147483648, %v304_v21 }
  0x5c   : > { %v209_v24 = vxor.u32 2147483648, %v306_v22 }
  0x5d   : > { %v213_v3 = vsel %vm211_vm9, %v212_v23, %v306_v22 }
  0x5e   : > { %v210_v25 = vsel %vm208_vm10, %v304_v21, %v209_v24 }
  0x5f   : > { %v214_v26 = vsel %vm207_vm11, %v210_v25, %v213_v3 }
  0x60   : > { %v215_v27 = vsel %vm205_vm12, nan, %v214_v26 }
  0x61   : > { %v216_v28 = vsub.f32 1.0, %v215_v27 }
  0x63   : > { %v217_v29 = vadd.f32 %v216_v28, %v347_v0 }
  0x65   : > { %218 = vst [vmem:[%s111_s14] sm:$0xff] %v217_v29 }
  0x66 PF: > { %s11_s6 = sadd.s32 1, %s313_s6  }
  0x67   : > { %p8_p4 = scmp.ge.s32.totalorder %s11_s6, 4  }
  0x69   :  { %10 = sbr.rel (!%p8_p4) target bundleno = 1 (0x1), region = 54 }

</bundles_post_ra>
